<compile_context>
chip_gen: v7x
topology: tpu7x:2x2x1
jax: 0.10.0
libtpu: 0.0.40
codegen_flags: <defaults>
</compile_context>

<pallas_src>
import jax
import jax.numpy as jnp
from jax.experimental import pallas as pl
from jax.experimental.pallas import tpu as pltpu


_FALLBACK_PLAN = (1024, 2048, 32 * 1024 * 1024)   # (tm_max, tk_max, vmem_limit)


def _round_up(x, m):
    return ((x + m - 1) // m) * m


def _hw_plan():
    """Per-generation (tm_max, tk_max, vmem_limit_bytes) from VMEM capacity."""
    try:
        info = pltpu.get_tpu_info()
        cap = getattr(info, "vmem_capacity_bytes", None)
    except Exception:
        cap = None
    if cap is None:
        return _FALLBACK_PLAN
    if cap >= 100 * 1024 * 1024:
        # v5e / v6e: 128 MiB physical VMEM -> big streaming tiles, 64 MiB scoped limit.
        return 2048, 4096, 64 * 1024 * 1024
    # v7x-class: 64 MiB physical VMEM -> smaller A tiles so double-buffering fits,
    # and tm small enough that >= 2 row tiles exist to feed both TensorCores.
    limit = min(44 * 1024 * 1024, max(cap - 16 * 1024 * 1024, 24 * 1024 * 1024))
    return 1024, 2048, limit


def _tiles_for(n, tm_max, tk_max):
    """Pick (tm, tk, padded_n). Single full block for small graphs; 128-aligned
    streaming tiles (zero-padded node axis) for large ones. tk always divides n_p."""
    if n <= tm_max:
        return n, n, n
    tm = tm_max
    n_p = _round_up(n, tm)
    tk = tk_max if n_p % tk_max == 0 else tm
    return tm, tk, n_p


# ----------------------------- kernels ---------------------------------------

def _gcn_layer_kernel(a_ref, xw_ref, b_ref, wnext_ref, out_ref, acc_ref):
    """out[i-tile] = relu( sum_k A[i,k] @ XW[k] + b ) @ W_next.

    Pure A-tile stream: the only per-(i,k) work is one bf16 MXU matmul into the f32
    accumulator. The next layer's feature transform is fused into the finalize so it
    runs exactly once per row tile.
    """
    k = pl.program_id(1)

    @pl.when(k == 0)
    def _init():
        acc_ref[...] = jnp.zeros_like(acc_ref)

    acc_ref[...] += jnp.dot(a_ref[...], xw_ref[...],
                            preferred_element_type=jnp.float32)

    @pl.when(k == pl.num_programs(1) - 1)
    def _finalize():
        h = jnp.maximum(acc_ref[...] + b_ref[...], 0.0)
        out_ref[...] = jnp.dot(h.astype(jnp.bfloat16), wnext_ref[...],
                               preferred_element_type=jnp.float32
                               ).astype(out_ref.dtype)


def _gcn_head_kernel(pa_ref, xw_ref, b3_ref, wl_ref, bl_ref, out_ref, acc_ref):
    """conv3 with the mean-pool folded in, plus the linear head.

    g = sum_k PA[:, k] @ XW3[k] + b3 ;  y = g @ Wl + bl   (g kept in f32)
    """
    k = pl.program_id(0)

    @pl.when(k == 0)
    def _init():
        acc_ref[...] = jnp.zeros_like(acc_ref)

    acc_ref[...] += jnp.dot(pa_ref[...], xw_ref[...],
                            preferred_element_type=jnp.float32)

    @pl.when(k == pl.num_programs(0) - 1)
    def _finalize():
        g = acc_ref[...] + b3_ref[...]             # pooled graph embeddings (G, H), f32
        # F.dropout(p=0.5, training=False) == identity.
        y = jnp.dot(g, wl_ref[...], preferred_element_type=jnp.float32) + bl_ref[...]
        out_ref[...] = y.astype(out_ref.dtype)


# ----------------------------- pallas_call wrappers ---------------------------

def _gcn_layer(a_bf, xw_bf, b_f32, wnext_bf, *, tm, tk, vmem_limit):
    n_p = a_bf.shape[0]
    hid = xw_bf.shape[1]
    hid_out = wnext_bf.shape[1]
    grid = (n_p // tm, n_p // tk)
    return pl.pallas_call(
        _gcn_layer_kernel,
        out_shape=jax.ShapeDtypeStruct((n_p, hid_out), jnp.bfloat16),
        grid_spec=pltpu.PrefetchScalarGridSpec(
            num_scalar_prefetch=0,
            grid=grid,
            in_specs=[
                pl.BlockSpec((tm, tk), lambda i, k: (i, k)),          # A_hat tile (streamed)
                pl.BlockSpec((tk, hid), lambda i, k: (k, 0)),         # precomputed XW tile
                pl.BlockSpec((1, hid), lambda i, k: (0, 0)),          # bias (resident)
                pl.BlockSpec((hid, hid_out), lambda i, k: (0, 0)),    # next layer's weight
            ],
            out_specs=pl.BlockSpec((tm, hid_out), lambda i, k: (i, 0)),
            scratch_shapes=[pltpu.VMEM((tm, hid), jnp.float32)],
        ),
        compiler_params=pltpu.CompilerParams(
            dimension_semantics=("parallel", "arbitrary"),
            vmem_limit_bytes=int(vmem_limit),
        ),
    )(a_bf, xw_bf, b_f32, wnext_bf)


def _gcn_head(pa_bf, xw3_bf, b3_f32, wl_f32, bl_f32, *, tk, vmem_limit):
    n_p = xw3_bf.shape[0]
    g = pa_bf.shape[0]
    hid = xw3_bf.shape[1]
    c = wl_f32.shape[1]
    grid = (n_p // tk,)
    return pl.pallas_call(
        _gcn_head_kernel,
        out_shape=jax.ShapeDtypeStruct((g, c), jnp.float32),
        grid_spec=pltpu.PrefetchScalarGridSpec(
            num_scalar_prefetch=0,
            grid=grid,
            in_specs=[
                pl.BlockSpec((g, tk), lambda k: (0, k)),      # P @ A_hat column tile
                pl.BlockSpec((tk, hid), lambda k: (k, 0)),    # xw3 = h2 @ W3 source tile
                pl.BlockSpec((1, hid), lambda k: (0, 0)),     # b3
                pl.BlockSpec((hid, c), lambda k: (0, 0)),     # Wl (f32, resident)
                pl.BlockSpec((1, c), lambda k: (0, 0)),       # bl
            ],
            out_specs=pl.BlockSpec((g, c), lambda k: (0, 0)),
            scratch_shapes=[pltpu.VMEM((g, hid), jnp.float32)],
        ),
        compiler_params=pltpu.CompilerParams(
            dimension_semantics=("arbitrary",),
            vmem_limit_bytes=int(vmem_limit),
        ),
    )(pa_bf, xw3_bf, b3_f32, wl_f32, bl_f32)


# ----------------------------- graph prep & forward ---------------------------

def prepare_graph(a_hat, pool):
    """One-time graph preprocessing. Hoist this out of the hot path for static graphs.

    Order matters for HBM traffic: cast A to bf16 FIRST (the only f32 pass over the
    N x N array), pad the bf16 copy, and compute PA = P @ A from the bf16 copy.
    """
    n = a_hat.shape[0]
    tm_max, tk_max, vmem_limit = _hw_plan()
    tm, tk, n_p = _tiles_for(n, tm_max, tk_max)

    bf = jnp.bfloat16
    a_bf = a_hat.astype(bf)
    pool_bf = pool.astype(bf)
    if n_p != n:
        pad = n_p - n
        a_bf = jnp.pad(a_bf, ((0, pad), (0, pad)))
        pool_bf = jnp.pad(pool_bf, ((0, 0), (0, pad)))
    # Mean-pool folded into conv3: rows of P sum to 1, so the conv3 bias commutes
    # through the pool (identical up to rounding/reassociation).
    pa_bf = jnp.dot(pool_bf, a_bf, preferred_element_type=jnp.float32).astype(bf)

    return dict(a=a_bf, pa=pa_bf, n=n, n_p=n_p, tm=tm, tk=tk,
                vmem_limit=vmem_limit)


def gcn_apply(graph, x, params):
    (w1, b1, w2, b2, w3, b3, wl, bl) = params
    bf = jnp.bfloat16
    n, n_p = graph["n"], graph["n_p"]
    if n_p != n:
        x = jnp.pad(x, ((0, n_p - n), (0, 0)))

    # Layer-1 feature transform hoisted out of the aggregation loop (done once over
    # all nodes); layers 2/3 transforms are fused into the previous layer's finalize.
    xw1 = jnp.dot(x.astype(bf), w1.astype(bf),
                  preferred_element_type=jnp.float32).astype(bf)

    kw = dict(tm=graph["tm"], tk=graph["tk"], vmem_limit=graph["vmem_limit"])
    # NOTE(correctness): padded rows of xw2/xw3 hold relu(b) @ W_next != 0. This is
    # exact ONLY because the padded COLUMNS of A / PA are zero, so padded rows are
    # never read by the aggregation matmuls. Do not sum activation rows directly.
    xw2 = _gcn_layer(graph["a"], xw1, b1, w2.astype(bf), **kw)   # = h1 @ W2
    xw3 = _gcn_layer(graph["a"], xw2, b2, w3.astype(bf), **kw)   # = h2 @ W3
    return _gcn_head(graph["pa"], xw3, b3, wl, bl,
                     tk=graph["tk"], vmem_limit=graph["vmem_limit"])


def gcn_forward(a_hat, pool, x, params):
    return gcn_apply(prepare_graph(a_hat, pool), x, params)


# ----------------------------- plain-JAX glue ---------------------------------

def gcn_reference(a_hat, pool, x, params):
    """Pure-JAX f32 reference for correctness checking."""
    (w1, b1, w2, b2, w3, b3, wl, bl) = params
    h = jnp.maximum(a_hat @ (x @ w1) + b1, 0.0)
    h = jnp.maximum(a_hat @ (h @ w2) + b2, 0.0)
    h = a_hat @ (h @ w3) + b3
    g = pool @ h
    return g @ wl + bl


def build_normalized_adj(edge_index, num_nodes):
    """Dense D^{-1/2} (A + I) D^{-1/2}, matching GCNConv(normalize=True)."""
    src, dst = edge_index
    a = jnp.zeros((num_nodes, num_nodes), jnp.float32)
    a = a.at[dst, src].set(1.0)            # aggregate source -> target
    a = a + jnp.eye(num_nodes, dtype=jnp.float32)
    deg = jnp.sum(a, axis=1)
    dinv = jnp.where(deg > 0, 1.0 / jnp.sqrt(deg), 0.0)
    return dinv[:, None] * a * dinv[None, :]


def build_mean_pool(batch, num_graphs):
    """(G, N) matrix with P[g, n] = 1/count_g if batch[n] == g."""
    onehot = (batch[None, :] == jnp.arange(num_graphs)[:, None]).astype(jnp.float32)
    counts = jnp.maximum(jnp.sum(onehot, axis=1, keepdims=True), 1.0)
    return onehot / counts


def init_params(key, num_features, hidden, num_classes):
    ks = jax.random.split(key, 8)

    def glorot(k, fan_in, fan_out):
        lim = jnp.sqrt(6.0 / (fan_in + fan_out))
        return jax.random.uniform(k, (fan_in, fan_out), jnp.float32, -lim, lim)

    w1 = glorot(ks[0], num_features, hidden)
    b1 = jnp.zeros((1, hidden), jnp.float32)
    w2 = glorot(ks[1], hidden, hidden)
    b2 = jnp.zeros((1, hidden), jnp.float32)
    w3 = glorot(ks[2], hidden, hidden)
    b3 = jnp.zeros((1, hidden), jnp.float32)
    wl = glorot(ks[3], hidden, num_classes)
    bl = jax.random.uniform(ks[4], (1, num_classes), jnp.float32,
                            -1.0 / jnp.sqrt(hidden), 1.0 / jnp.sqrt(hidden))
    return (w1, b1, w2, b2, w3, b3, wl, bl)


if __name__ == "__main__":
    NUM_FEATURES = 8
    HIDDEN = 32
    NUM_CLASSES = 4
    NODES_PER_GRAPH = 8
    NUM_GRAPHS = 2
    N = NODES_PER_GRAPH * NUM_GRAPHS

    key = jax.random.PRNGKey(0)
    k_x, k_p = jax.random.split(key)

    # node features
    x = jax.random.normal(k_x, (N, NUM_FEATURES), jnp.float32)

    # two ring graphs (undirected: both edge directions listed)
    src_list, dst_list = [], []
    for g in range(NUM_GRAPHS):
        base = g * NODES_PER_GRAPH
        for i in range(NODES_PER_GRAPH):
            u = base + i
            v = base + (i + 1) % NODES_PER_GRAPH
            src_list += [u, v]
            dst_list += [v, u]
    edge_index = jnp.array([src_list, dst_list], dtype=jnp.int32)
    batch = jnp.repeat(jnp.arange(NUM_GRAPHS, dtype=jnp.int32), NODES_PER_GRAPH)

    a_hat = build_normalized_adj(edge_index, N)
    pool = build_mean_pool(batch, NUM_GRAPHS)
    params = init_params(k_p, NUM_FEATURES, HIDDEN, NUM_CLASSES)

    # static-graph path: preprocessing done once, reused across forward calls
    graph = prepare_graph(a_hat, pool)
    out = gcn_apply(graph, x, params)
    jax.block_until_ready(out)
    assert out.shape == (NUM_GRAPHS, NUM_CLASSES)

    ref = gcn_reference(a_hat, pool, x, params)
    # bf16 activations/weights vs. f32 reference -> loose tolerance.
    assert jnp.allclose(out, ref, atol=0.15, rtol=0.1), (out, ref)

    print("KERNEL_OK")
</pallas_src>

<mosaic_0001>
module attributes {stable_mosaic.version = 11 : i64} {
  func.func @_gcn_layer_kernel(%arg0: i32, %arg1: i32, %arg2: memref<16x16xbf16, #tpu.memory_space<vmem>>, %arg3: memref<16x32xbf16, #tpu.memory_space<vmem>>, %arg4: memref<1x32xf32, #tpu.memory_space<vmem>>, %arg5: memref<32x32xbf16, #tpu.memory_space<vmem>>, %arg6: memref<16x32xbf16, #tpu.memory_space<vmem>>, %arg7: memref<16x32xf32, #tpu.memory_space<vmem>>) attributes {dimension_semantics = [#tpu.dimension_semantics<parallel>, #tpu.dimension_semantics<arbitrary>], iteration_bounds = array<i64: 1, 1>, scalar_prefetch = 0 : i64, scratch_operands = 1 : i64, tpu.core_type = #tpu.core_type<tc>, window_params = [{transform_indices = @transform_0, window_bounds = array<i64: 16, 16>}, {transform_indices = @transform_1, window_bounds = array<i64: 16, 32>}, {pipeline_mode = #tpu.pipeline_mode<synchronous>, transform_indices = @transform_2, window_bounds = array<i64: 1, 32>}, {pipeline_mode = #tpu.pipeline_mode<synchronous>, transform_indices = @transform_3, window_bounds = array<i64: 32, 32>}, {transform_indices = @transform_4, window_bounds = array<i64: 16, 32>}]} {
    %c0_i32 = arith.constant 0 : i32
    %0 = arith.cmpi eq, %arg1, %c0_i32 : i32
    %1 = arith.extui %0 : i1 to i32
    %c0_i32_0 = arith.constant 0 : i32
    %2 = arith.cmpi ne, %1, %c0_i32_0 : i32
    scf.if %2 {
      %cst_10 = arith.constant 0.000000e+00 : f32
      %12 = vector.broadcast %cst_10 : f32 to vector<16x32xf32>
      %c0_11 = arith.constant 0 : index
      %c0_12 = arith.constant 0 : index
      %13 = vector.load %arg7[%c0_11, %c0_12] : memref<16x32xf32, #tpu.memory_space<vmem>>, vector<16x32xf32>
      tpu.vector_store %arg7[%c0_11, %c0_12], %12 {strides = array<i32>} : memref<16x32xf32, #tpu.memory_space<vmem>>, vector<16x32xf32>,
    } else {
    }
    %c0 = arith.constant 0 : index
    %c0_1 = arith.constant 0 : index
    %3 = vector.load %arg7[%c0, %c0_1] : memref<16x32xf32, #tpu.memory_space<vmem>>, vector<16x32xf32>
    %c0_2 = arith.constant 0 : index
    %c0_3 = arith.constant 0 : index
    %4 = vector.load %arg2[%c0_2, %c0_3] : memref<16x16xbf16, #tpu.memory_space<vmem>>, vector<16x16xbf16>
    %c0_4 = arith.constant 0 : index
    %c0_5 = arith.constant 0 : index
    %5 = vector.load %arg3[%c0_4, %c0_5] : memref<16x32xbf16, #tpu.memory_space<vmem>>, vector<16x32xbf16>
    %cst = arith.constant dense<0.000000e+00> : vector<16x32xf32>
    %6 = tpu.matmul %4, %5, %cst {dimension_numbers = #tpu.dot_dimension_numbers<[1], [0], [0], [1], [0, 0, 1, 1], [], []>} : vector<16x16xbf16>, vector<16x32xbf16>, vector<16x32xf32> -> vector<16x32xf32>
    %7 = arith.addf %3, %6 : vector<16x32xf32>
    %c0_6 = arith.constant 0 : index
    %c0_7 = arith.constant 0 : index
    %8 = vector.load %arg7[%c0_6, %c0_7] : memref<16x32xf32, #tpu.memory_space<vmem>>, vector<16x32xf32>
    tpu.vector_store %arg7[%c0_6, %c0_7], %7 {strides = array<i32>} : memref<16x32xf32, #tpu.memory_space<vmem>>, vector<16x32xf32>,
    %c0_i32_8 = arith.constant 0 : i32
    %9 = arith.cmpi eq, %arg1, %c0_i32_8 : i32
    %10 = arith.extui %9 : i1 to i32
    %c0_i32_9 = arith.constant 0 : i32
    %11 = arith.cmpi ne, %10, %c0_i32_9 : i32
    scf.if %11 {
      %c0_10 = arith.constant 0 : index
      %c0_11 = arith.constant 0 : index
      %12 = vector.load %arg7[%c0_10, %c0_11] : memref<16x32xf32, #tpu.memory_space<vmem>>, vector<16x32xf32>
      %c0_12 = arith.constant 0 : index
      %c0_13 = arith.constant 0 : index
      %13 = vector.load %arg4[%c0_12, %c0_13] : memref<1x32xf32, #tpu.memory_space<vmem>>, vector<1x32xf32>
      %14 = vector.broadcast %13 : vector<1x32xf32> to vector<16x32xf32>
      %15 = arith.addf %12, %14 : vector<16x32xf32>
      %cst_14 = arith.constant 0.000000e+00 : f32
      %16 = vector.broadcast %cst_14 : f32 to vector<16x32xf32>
      %17 = arith.maximumf %15, %16 : vector<16x32xf32>
      %18 = arith.truncf %17 : vector<16x32xf32> to vector<16x32xbf16>
      %c0_15 = arith.constant 0 : index
      %c0_16 = arith.constant 0 : index
      %19 = vector.load %arg5[%c0_15, %c0_16] : memref<32x32xbf16, #tpu.memory_space<vmem>>, vector<32x32xbf16>
      %cst_17 = arith.constant dense<0.000000e+00> : vector<16x32xf32>
      %20 = tpu.matmul %18, %19, %cst_17 {dimension_numbers = #tpu.dot_dimension_numbers<[1], [0], [0], [1], [0, 0, 1, 1], [], []>} : vector<16x32xbf16>, vector<32x32xbf16>, vector<16x32xf32> -> vector<16x32xf32>
      %21 = arith.truncf %20 : vector<16x32xf32> to vector<16x32xbf16>
      %c0_18 = arith.constant 0 : index
      %c0_19 = arith.constant 0 : index
      %22 = vector.load %arg6[%c0_18, %c0_19] : memref<16x32xbf16, #tpu.memory_space<vmem>>, vector<16x32xbf16>
      tpu.vector_store %arg6[%c0_18, %c0_19], %21 {strides = array<i32>} : memref<16x32xbf16, #tpu.memory_space<vmem>>, vector<16x32xbf16>,
    } else {
    }
    return
  }
  func.func @transform_0(%arg0: i32, %arg1: i32) -> (i32, i32) {
    %c0_i32 = arith.constant 0 : i32
    return %arg0, %arg1 : i32, i32
  }
  func.func @transform_1(%arg0: i32, %arg1: i32) -> (i32, i32) {
    %c0_i32 = arith.constant 0 : i32
    %c0_i32_0 = arith.constant 0 : i32
    return %arg1, %c0_i32 : i32, i32
  }
  func.func @transform_2(%arg0: i32, %arg1: i32) -> (i32, i32) {
    %c0_i32 = arith.constant 0 : i32
    %c0_i32_0 = arith.constant 0 : i32
    %c0_i32_1 = arith.constant 0 : i32
    return %c0_i32, %c0_i32_0 : i32, i32
  }
  func.func @transform_3(%arg0: i32, %arg1: i32) -> (i32, i32) {
    %c0_i32 = arith.constant 0 : i32
    %c0_i32_0 = arith.constant 0 : i32
    %c0_i32_1 = arith.constant 0 : i32
    return %c0_i32, %c0_i32_0 : i32, i32
  }
  func.func @transform_4(%arg0: i32, %arg1: i32) -> (i32, i32) {
    %c0_i32 = arith.constant 0 : i32
    %c0_i32_0 = arith.constant 0 : i32
    return %arg0, %c0_i32 : i32, i32
  }
}

</mosaic_0001>

<bundles_post_ra>
// kernel: tpu_custom_call.1
= control target key start
LH: loop header
LB: loop body
LE: loop exit
PB: predicated region body
PF: predicated region fallthrough
CT: control target
= control target key end

     0   :  { %9 = vsyncpa [#allocation4], 0  ;;  %s484_s0 = inlined_call_operand.hbm [shape: bf16[16,16], index: 0, kind: input, shape index: {}]   ;;  %s485_s1 = inlined_call_operand.hbm [shape: bf16[16,32], index: 1, kind: input, shape index: {}]   ;;  %s486_s2 = inlined_call_operand.vmem [shape: f32[1,32], index: 2, kind: input, shape index: {}]   ;;  %s487_s3 = inlined_call_operand.hbm [shape: bf16[32,32], index: 3, kind: input, shape index: {}]   ;;  %s488_s4 = inlined_call_operand.hbm [shape: bf16[16,32], index: 4, kind: output, shape index: {}]  }
   0x1   :  { %10 = vsyncpa [#allocation7], 0 }
   0x2   :  { %11 = vsyncpa [#allocation5], 0  ;;  %s376_s15 = smov [#allocation6]   ;;  %s377_s17 = smov [#allocation3]  }
   0x3   :  { %s29_s16 = sshll.u32 %s376_s15, 4  ;;  %s17_s18 = sshll.u32 %s377_s17, 4  ;;  %s30_s16 = int_to_ptr.vmem [resolvable:$true] %s29_s16  ;;  %s409_s18 = int_to_ptr.vmem [resolvable:$true] %s17_s18 }
   0x4   :  { %s282_s21 = scalar_lea.hbm %s485_s1, 128 }
   0x5   :  { %p283_p0 = scmp.ne.s32.totalorder %s485_s1, %s282_s21  ;;  %p286_p1 = scmp.lt.u32.totalorder %s282_s21, %s485_s1 }
   0x7   :  { %p288_p2 = pnand %p286_p1, %p283_p0 }
   0x9   :  { %291 = shalt.err (!%p288_p2)
}
   0xa   :  { %s292_s26 = scalar_lea.vmem %s30_s16, 128  ;;  %p297_p4 = scmp.lt.s32.totalorder %s30_s16, %s30_s16 }
   0xb   :  { %p293_p3 = scmp.ne.s32.totalorder %s30_s16, %s292_s26  ;;  %p298_p5 = scmp.lt.s32.totalorder %s292_s26, %s292_s26 }
   0xd   :  { %p299_p6 = por %p298_p5, %p297_p4 }
   0xf   :  { %p300_p7 = pnand %p299_p6, %p293_p3 }
  0x11   :  { %303 = shalt.err (!%p300_p7)
}
  0x12   :  { %s378_s27 = smov 64   ;;  %s379_s28 = smov 4  }
  0x13   :  { %35 = dma.hbm_to_vmem [thread:$0]  %s485_s1, 128, %s30_s16, [#allocation7], %s378_s27, %s378_s27, %s379_s28  }
  0x14   :  { %s304_s7 = scalar_lea.hbm %s484_s0, 128 }
  0x15   :  { %p305_p8 = scmp.ne.s32.totalorder %s484_s0, %s304_s7  ;;  %p308_p9 = scmp.lt.u32.totalorder %s304_s7, %s484_s0 }
  0x17   :  { %p310_p10 = pnand %p308_p9, %p305_p8 }
  0x19   :  { %313 = shalt.err (!%p310_p10)
}
  0x1a   :  { %s314_s12 = scalar_lea.vmem %s409_s18, 128  ;;  %p319_p12 = scmp.lt.s32.totalorder %s409_s18, %s409_s18 }
  0x1b   :  { %p315_p11 = scmp.ne.s32.totalorder %s409_s18, %s314_s12  ;;  %p320_p13 = scmp.lt.s32.totalorder %s314_s12, %s314_s12 }
  0x1d   :  { %p321_p0 = por %p320_p13, %p319_p12 }
  0x1f   :  { %p322_p1 = pnand %p321_p0, %p315_p11 }
  0x21   :  { %325 = shalt.err (!%p322_p1)
}
  0x22   :  { %23 = dma.hbm_to_vmem [thread:$0]  %s484_s0, 128, %s409_s18, [#allocation4], %s378_s27, %s378_s27, %s379_s28  }
  0x23   :  { %s380_s14 = smov [#allocation8]   ;;  %s326_s19 = scalar_lea.hbm %s487_s3, 256 }
  0x24   :  { %s43_s15 = sshll.u32 %s380_s14, 4  ;;  %p327_p2 = scmp.ne.s32.totalorder %s487_s3, %s326_s19  ;;  %s44_s15 = int_to_ptr.vmem [resolvable:$true] %s43_s15 }
  0x25   :  { %p330_p3 = scmp.lt.u32.totalorder %s326_s19, %s487_s3 }
  0x27   :  { %p332_p4 = pnand %p330_p3, %p327_p2 }
  0x29   :  { %335 = shalt.err (!%p332_p4)
}
  0x2a   :  { %s336_s24 = scalar_lea.vmem %s44_s15, 256  ;;  %p341_p6 = scmp.lt.s32.totalorder %s44_s15, %s44_s15 }
  0x2b   :  { %p337_p5 = scmp.ne.s32.totalorder %s44_s15, %s336_s24  ;;  %p342_p7 = scmp.lt.s32.totalorder %s336_s24, %s336_s24 }
  0x2d   :  { %p343_p8 = por %p342_p7, %p341_p6 }
  0x2f   :  { %p344_p9 = pnand %p343_p8, %p337_p5 }
  0x31   :  { %347 = shalt.err (!%p344_p9)
}
  0x32   :  { %49 = dma.hbm_to_vmem [thread:$0]  %s487_s3, 256, %s44_s15, [#allocation7], %s378_s27, %s378_s27, %s379_s28  }
  0x33   :  { %370 = dma.done.wait [#allocation4], 128  }
  0x34   :  { %371 = vsyncadd [#allocation4], 4294967168 }
  0x35   :  { %372 = dma.done.wait [#allocation7], 384  }
  0x36   :  { %373 = vsyncadd [#allocation7], 4294966912  ;;  %vm64_vm0 = vcmask 261120   ;;  %v381_v0 = vmov 0.0   ;;  %vm382_vm1 = vmmov 0   ;;  %v278_v1 = vld [vmem:[#allocation6] sm:$0xff]  }
  0x37   :  { %256 = vmatprep.subr.bf16.mxu0 %v381_v0  ;;  %258 = vmatprep.mubr.msk.bf16.mxu0 %vm382_vm1, %v381_v0  ;;  %65 = vst.msk [vmem:[#allocation2] sm:$0xff] %vm64_vm0, %v381_v0  ;;  %66 = vst.msk [vmem:[#allocation2 + $0x8] sm:$0xff] %vm64_vm0, %v381_v0  ;;  %v279_v2 = vld [vmem:[#allocation3] sm:$0xff]   ;;  %vm84_vm2 = vcmask 130048   ;;  %v280_v3 = vld [vmem:[#allocation8] sm:$0xff]   ;;  %vm219_vm3 = vcmask 257024  }
  0x38   :  { %262 = vmatprep.subr.bf16.mxu1 %v381_v0  ;;  %266 = vmatprep.mubr.msk.bf16.mxu1 %vm382_vm1, %v381_v0  ;;  %v281_v4 = vld [vmem:[#allocation8 + $0x8] sm:$0xff]   ;;  %v243_v13 = vld [vmem:[%s486_s2] ss:$0 sm:$0xff]  ;;  %s383_s26 = smov [#allocation9]  }
  0x39   :  { %257 = vmatpush3.bf16.msra.mxu0 %v278_v1  ;;  %263 = vmatpush3.bf16.msra.mxu1 %v280_v3  ;;  %s227_s29 = sshll.u32 %s383_s26, 4  ;;  %s228_s29 = int_to_ptr.vmem [resolvable:$true] %s227_s29 }
  0x3a   :  { %264 = vmatprep.subr.bf16.mxu1 %v381_v0  ;;  %s348_s2 = scalar_lea.vmem %s228_s29, 128  ;;  %p353_p11 = scmp.lt.s32.totalorder %s228_s29, %s228_s29 }
  0x3b   :  { %p349_p10 = scmp.ne.s32.totalorder %s228_s29, %s348_s2  ;;  %p354_p12 = scmp.lt.s32.totalorder %s348_s2, %s348_s2 }
  0x3c   :  { %259 = vmatmul.mubr.msk.bf16.vlgmr.msra.gmra.mrb[0].mxu0 %vm84_vm2, %v279_v2 }
  0x3d   :  { %265 = vmatpush3.bf16.msra.mxu1 %v281_v4  ;;  %p355_p13 = por %p354_p12, %p353_p11 }
  0x3e   :  { %v67_v5 = vld [vmem:[#allocation2] sm:$0xff]  ;;  %v68_v7 = vld [vmem:[#allocation2 + $0x8] sm:$0xff] }
  0x3f   :  { %p356_p0 = pnand %p355_p13, %p349_p10 }
 0x10f   :  { %v122_v6 = vpop.f32.mrb[0].mxu0 }
 0x110   :  { %v129_v8 = vadd.f32 %v122_v6, %v67_v5  ;;  %v260_v9 = vpop.f32.mrb[1].mxu0 }
 0x111   :  { %v125_v10 = vpop.f32.mrb[2].mxu0 }
 0x112   :  { %132 = vst.msk [vmem:[#allocation2] sm:$0xff] %vm64_vm0, %v129_v8  ;;  %v130_v11 = vadd.f32 %v125_v10, %v68_v7  ;;  %v261_v12 = vpop.f32.mrb[3].mxu0 }
 0x114   :  { %133 = vst.msk [vmem:[#allocation2 + $0x8] sm:$0xff] %vm64_vm0, %v130_v11 }
 0x119   :  { %v137_v14 = vld [vmem:[#allocation2] sm:$0xff] }
 0x11a   :  { %v146_v15 = vadd.f32 %v243_v13, %v137_v14 }
 0x11b   :  { %v138_v16 = vld [vmem:[#allocation2 + $0x8] sm:$0xff] }
 0x11c   :  { %v147_v17 = vadd.f32 %v243_v13, %v138_v16  ;;  %v148_v18 = vmax.f32 %v146_v15, 0.0 }
 0x11e   :  { %v149_v19 = vmax.f32 %v147_v17, 0.0 }
 0x120   :  { %v150_v20 = vpack.c.bf16 %v149_v19, %v148_v18 }
 0x122   :  { %267 = vmatmul.mubr.msk.bf16.vlgmr.msra.gmra.mrb[0].mxu1 %vm64_vm0, %v150_v20 }
 0x1f5   :  { %v204_v21 = vpop.f32.mrb[0].mxu1 }
 0x1f6   :  { %v249_v22 = vpack.c.bf16 %v204_v21, %v204_v21  ;;  %v268_v23 = vpop.f32.mrb[1].mxu1 }
 0x1f7   :  { %v207_v24 = vpop.f32.mrb[2].mxu1 }
 0x1f8   :  { %v250_v25 = vpack.c.bf16 %v207_v24, %v207_v24  ;;  %v269_v26 = vpop.f32.mrb[3].mxu1  ;;  %220 = vst.msk [vmem:[#allocation9] sm:$0xf] %vm219_vm3, %v249_v22 }
 0x1fa   :  { %221 = vst.msk [vmem:[#allocation9 + $0x4] sm:$0xf] %vm219_vm3, %v250_v25 }
 0x1fb   :  { %359 = shalt.err (!%p356_p0)
}
 0x1fc   :  { %s360_s6 = scalar_lea.hbm %s488_s4, 128 }
 0x1fd   :  { %p361_p1 = scmp.ne.s32.totalorder %s488_s4, %s360_s6  ;;  %p364_p2 = scmp.lt.u32.totalorder %s360_s6, %s488_s4 }
 0x1ff   :  { %p366_p3 = pnand %p364_p2, %p361_p1 }
 0x201   :  { %369 = shalt.err (!%p366_p3)
}
 0x202   :  { %233 = dma.vmem_to_hbm [thread:$0]  %s228_s29, 128, %s488_s4, [#allocation5], %s378_s27, %s378_s27, %s379_s28  }
 0x203   :  { %374 = dma.done.wait [#allocation5], 128  }
 0x204   :  { %375 = vsyncadd [#allocation5], 4294967168 }
 0x205   :  { %237 = vsyncpa [#allocation4], 1 }
 0x206   :  { %238 = vsyncpa [#allocation7], 1 }
 0x207   :  { %239 = vsyncpa [#allocation5], 1 }

</bundles_post_ra>
